<compile_context>
chip_gen: v7x
topology: tpu7x:2x2x1
jax: 0.10.0
libtpu: 0.0.40
codegen_flags: <defaults>
</compile_context>

<pallas_src>
import functools
import math

import jax
import jax.numpy as jnp
from jax.experimental import pallas as pl
from jax.experimental.pallas import tpu as pltpu


# ----------------------------- hardware helpers ------------------------------

@functools.lru_cache(maxsize=None)
def _vmem_limit_bytes():
    """Generation-aware scoped-VMEM cap (v5e/v6e: 128 MiB phys, v7x: 64 MiB)."""
    try:
        info = pltpu.get_tpu_info()
        phys = getattr(info, "vmem_capacity_bytes", None)
        if phys:
            return int(min(phys * 3 // 4, 100 * 1024 * 1024))
    except Exception:
        pass
    return 48 * 1024 * 1024  # safe on every generation (< v7x's 64 MiB)


def _pick_tile(dim, cap):
    """Largest tile <= cap that evenly divides dim.

    Prefers 256-multiples (v6e/v7x 256-wide MXU), then 128-multiples (v5e,
    lane width).  If dim already fits under the cap, use the whole axis —
    'block equals full array dim' always satisfies the (8,128) tiling rule.
    """
    if dim <= cap:
        return dim
    for step in (256, 128):
        t = (cap // step) * step
        while t >= step:
            if dim % t == 0:
                return t
            t -= step
    # TODO(synk): non-128-divisible axes fall back to a whole-axis block; pad
    # M/N/K to 128 multiples in the caller if this ever blows the VMEM cap.
    return dim


# ----------------------------- dense (matmul) --------------------------------

def _gelu(x):
    # tanh-approximation GELU (f32 math; very close to BERT's erf gelu).
    c = math.sqrt(2.0 / math.pi)
    return 0.5 * x * (1.0 + jnp.tanh(c * (x + 0.044715 * x * x * x)))


def _dense_kernel(x_ref, w_ref, b_ref, o_ref, acc_ref, *, activation):
    k = pl.program_id(2)

    @pl.when(k == 0)
    def _():
        acc_ref[...] = jnp.zeros_like(acc_ref)

    # bf16 MXU inputs, f32 accumulation (astype is a no-op when already bf16).
    acc_ref[...] += jnp.dot(
        x_ref[...].astype(jnp.bfloat16),
        w_ref[...].astype(jnp.bfloat16),
        preferred_element_type=jnp.float32,
    )

    @pl.when(k == pl.num_programs(2) - 1)
    def _():
        y = acc_ref[...] + b_ref[...].astype(jnp.float32)
        if activation == "gelu":
            y = _gelu(y)
        elif activation == "tanh":
            y = jnp.tanh(y)
        o_ref[...] = y.astype(o_ref.dtype)


def dense(x, w, b, activation=None, *, tm_cap=1024, tn_cap=1024, tk_cap=768):
    """x: (M, K) bf16 @ w: (K, N) bf16 + b: (1, N) f32 -> (M, N) bf16."""
    M, K = x.shape
    N = w.shape[1]
    tm = _pick_tile(M, tm_cap)
    tn = _pick_tile(N, tn_cap)
    tk = _pick_tile(K, tk_cap)
    grid = (M // tm, N // tn, K // tk)
    return pl.pallas_call(
        functools.partial(_dense_kernel, activation=activation),
        out_shape=jax.ShapeDtypeStruct((M, N), jnp.bfloat16),
        grid_spec=pltpu.PrefetchScalarGridSpec(
            num_scalar_prefetch=0,
            grid=grid,
            in_specs=[
                pl.BlockSpec((tm, tk), lambda i, j, k: (i, k)),
                pl.BlockSpec((tk, tn), lambda i, j, k: (k, j)),
                pl.BlockSpec((1, tn), lambda i, j, k: (0, j)),  # bias: const over i,k
            ],
            out_specs=pl.BlockSpec((tm, tn), lambda i, j, k: (i, j)),
            scratch_shapes=[pltpu.VMEM((tm, tn), jnp.float32)],
        ),
        # (i, j) parallel for megacore sharding on v7x; reduction axis arbitrary.
        compiler_params=pltpu.CompilerParams(
            dimension_semantics=("parallel", "parallel", "arbitrary"),
            vmem_limit_bytes=_vmem_limit_bytes(),
        ),
    )(x, w, b)


# ------------------------------- LayerNorm -----------------------------------

def _ln_math(x, g, b, eps):
    mu = jnp.mean(x, axis=-1, keepdims=True)
    var = jnp.mean(jnp.square(x - mu), axis=-1, keepdims=True)
    return (x - mu) * jax.lax.rsqrt(var + eps) * g + b


def _layernorm_kernel(x_ref, g_ref, b_ref, o_ref, *, eps):
    o_ref[...] = _ln_math(
        x_ref[...].astype(jnp.float32), g_ref[...], b_ref[...], eps
    ).astype(o_ref.dtype)


def _add_layernorm_kernel(x_ref, y_ref, g_ref, b_ref, o_ref, *, eps):
    s = x_ref[...].astype(jnp.float32) + y_ref[...].astype(jnp.float32)
    o_ref[...] = _ln_math(s, g_ref[...], b_ref[...], eps).astype(o_ref.dtype)


def _ln_call(kernel, inputs, M, H, eps):
    # Pure HBM-roofline kernel: large row tiles (>=512) get ~85% of roofline.
    tm = _pick_tile(M, 1024)
    row_spec = pl.BlockSpec((tm, H), lambda i: (i, 0))
    vec_spec = pl.BlockSpec((1, H), lambda i: (0, 0))
    n_rows = len(inputs) - 2  # trailing two inputs are gamma/beta
    return pl.pallas_call(
        functools.partial(kernel, eps=eps),
        out_shape=jax.ShapeDtypeStruct((M, H), jnp.bfloat16),
        grid_spec=pltpu.PrefetchScalarGridSpec(
            num_scalar_prefetch=0,
            grid=(M // tm,),
            in_specs=[row_spec] * n_rows + [vec_spec, vec_spec],
            out_specs=row_spec,
        ),
        compiler_params=pltpu.CompilerParams(
            dimension_semantics=("parallel",),
            vmem_limit_bytes=_vmem_limit_bytes(),
        ),
    )(*inputs)


def layernorm(x, g, b, eps=1e-12):
    M, H = x.shape
    return _ln_call(_layernorm_kernel, (x, g, b), M, H, eps)


def add_layernorm(x, y, g, b, eps=1e-12):
    """LayerNorm(x + y): residual add fused with the norm (one HBM round trip)."""
    M, H = x.shape
    return _ln_call(_add_layernorm_kernel, (x, y, g, b), M, H, eps)


# --------------------------- flash-style attention ---------------------------

def _flash_attn_kernel(q_ref, k_ref, v_ref, bias_ref, o_ref,
                       m_sc, l_sc, acc_sc, *, scale):
    ki = pl.program_id(2)

    @pl.when(ki == 0)
    def _():
        m_sc[...] = jnp.full_like(m_sc, -jnp.inf)
        l_sc[...] = jnp.zeros_like(l_sc)
        acc_sc[...] = jnp.zeros_like(acc_sc)

    # 1/sqrt(dh) folded into the Q tile (tq*dh work) instead of scaling the
    # (tq, tk) score matrix every kv step.
    q = (q_ref[...].astype(jnp.float32) * scale).astype(jnp.bfloat16)
    k = k_ref[...].astype(jnp.bfloat16)
    # scores (tq, tk) in f32; contraction on both dim-1 (Q @ K^T).
    s = jax.lax.dot_general(q, k, (((1,), (1,)), ((), ())),
                            preferred_element_type=jnp.float32)
    s = s + bias_ref[...]                         # (1, tk) mask bias broadcasts

    m_prev = m_sc[...]
    m_new = jnp.maximum(m_prev, jnp.max(s, axis=-1, keepdims=True))
    alpha = jnp.exp(m_prev - m_new)
    p = jnp.exp(s - m_new)
    l_sc[...] = alpha * l_sc[...] + jnp.sum(p, axis=-1, keepdims=True)
    acc_sc[...] = alpha * acc_sc[...] + jnp.dot(
        p.astype(jnp.bfloat16), v_ref[...].astype(jnp.bfloat16),
        preferred_element_type=jnp.float32)
    m_sc[...] = m_new

    @pl.when(ki == pl.num_programs(2) - 1)
    def _():
        o_ref[...] = (acc_sc[...] *
                      pl.reciprocal(l_sc[...], approx=True)).astype(o_ref.dtype)


def flash_attention(q, k, v, bias, nh):
    """q/k/v: (B*nh, S, dh) bf16; bias: (B, 1, S) f32 -> (B*nh, S, dh) bf16.

    The mask bias stays per-batch and is broadcast over heads through the
    index_map (bh // nh) — no materialized nh x copy.  Large q/kv tiles (up to
    512) keep per-step overhead and KV over-read small; per-block VMEM is only
    a few hundred KiB, fine even on v7x.
    """
    BH, S, dh = q.shape
    tq = _pick_tile(S, 512)
    tk = _pick_tile(S, 512)
    grid = (BH, S // tq, S // tk)
    qo_spec = pl.BlockSpec((None, tq, dh), lambda bh, qi, ki: (bh, qi, 0))
    kv_spec = pl.BlockSpec((None, tk, dh), lambda bh, qi, ki: (bh, ki, 0))
    bias_spec = pl.BlockSpec((None, 1, tk), lambda bh, qi, ki: (bh // nh, 0, ki))
    return pl.pallas_call(
        functools.partial(_flash_attn_kernel, scale=1.0 / math.sqrt(dh)),
        out_shape=jax.ShapeDtypeStruct((BH, S, dh), jnp.bfloat16),
        grid_spec=pltpu.PrefetchScalarGridSpec(
            num_scalar_prefetch=0,
            grid=grid,
            in_specs=[qo_spec, kv_spec, kv_spec, bias_spec],
            out_specs=qo_spec,
            scratch_shapes=[pltpu.VMEM((tq, 1), jnp.float32),
                            pltpu.VMEM((tq, 1), jnp.float32),
                            pltpu.VMEM((tq, dh), jnp.float32)],
        ),
        compiler_params=pltpu.CompilerParams(
            dimension_semantics=("parallel", "parallel", "arbitrary"),
            vmem_limit_bytes=_vmem_limit_bytes(),
        ),
    )(q, k, v, bias)


# --------------------------- parameter construction --------------------------

def init_params(key, cfg):
    H, I, V = cfg["hidden"], cfg["inter"], cfg["vocab"]
    keys = iter(jax.random.split(key, 5 + 4 * cfg["layers"]))

    def w(shape, dtype=jnp.bfloat16):
        # encoder matmul weights stored bf16 (halves HBM traffic, bf16 MXU path)
        return (0.02 * jax.random.normal(next(keys), shape)).astype(dtype)

    def zeros(n):
        return jnp.zeros((1, n), jnp.float32)

    def ones(n):
        return jnp.ones((1, n), jnp.float32)

    params = {
        "word_emb": w((V, H), jnp.float32),
        "pos_emb": w((cfg["max_pos"], H), jnp.float32),
        "type_emb": w((2, H), jnp.float32),
        "emb_ln_g": ones(H),
        "emb_ln_b": zeros(H),
        "layers": [],
        "pool_w": w((H, H), jnp.float32),          # tiny head stays plain JAX / f32
        "pool_b": zeros(H),
        "cls_w": w((H, cfg["n_classes"]), jnp.float32),
        "cls_b": zeros(cfg["n_classes"]),
    }
    for _ in range(cfg["layers"]):
        params["layers"].append({
            "wqkv": w((H, 3 * H)), "bqkv": zeros(3 * H),   # fused Q/K/V projection
            "wo": w((H, H)), "bo": zeros(H),
            "ln1_g": ones(H), "ln1_b": zeros(H),
            "w1": w((H, I)), "b1": zeros(I),
            "w2": w((I, H)), "b2": zeros(H),
            "ln2_g": ones(H), "ln2_b": zeros(H),
        })
    return params


# ------------------------------- forward pass --------------------------------

def bert_classifier_forward(params, input_ids, attention_mask, cfg):
    B, S = input_ids.shape
    H = cfg["hidden"]
    nh = cfg["heads"]
    dh = H // nh

    # Embeddings (gather is glue, left in plain JAX). token_type hardwired to 0.
    emb = (params["word_emb"][input_ids]
           + params["pos_emb"][jnp.arange(S)][None, :, :]
           + params["type_emb"][0][None, None, :])
    # LayerNorm emits bf16; internal math stays f32.
    x = layernorm(emb.reshape(B * S, H), params["emb_ln_g"], params["emb_ln_b"])

    # Per-batch additive mask bias (B, 1, S); heads share it via the BlockSpec.
    mask_bias = ((1.0 - attention_mask.astype(jnp.float32)) * -10000.0)[:, None, :]

    # TODO(synk): head split/merge kept as plain-JAX layout glue (bf16 so the
    # traffic is halved vs before); folding them into the attention BlockSpecs
    # with 2*dh=128 head-pair column blocks would remove it entirely.
    def split_heads(t):
        return t.reshape(B, S, nh, dh).transpose(0, 2, 1, 3).reshape(B * nh, S, dh)

    def merge_heads(t):
        return t.reshape(B, nh, S, dh).transpose(0, 2, 1, 3).reshape(B * S, H)

    for lp in params["layers"]:
        # Self-attention block (fused QKV projection).
        qkv = dense(x, lp["wqkv"], lp["bqkv"])                 # (B*S, 3H) bf16
        q, k, v = qkv[:, :H], qkv[:, H:2 * H], qkv[:, 2 * H:]
        ctx = flash_attention(split_heads(q), split_heads(k), split_heads(v),
                              mask_bias, nh)
        attn_out = dense(merge_heads(ctx), lp["wo"], lp["bo"])
        x = add_layernorm(x, attn_out, lp["ln1_g"], lp["ln1_b"])

        # Feed-forward block (GELU fused into the matmul finalize).
        ffn = dense(x, lp["w1"], lp["b1"], activation="gelu")
        ffn_out = dense(ffn, lp["w2"], lp["b2"])
        x = add_layernorm(x, ffn_out, lp["ln2_g"], lp["ln2_b"])

    # Pooler (tanh dense on [CLS]) + classifier: tiny (M=B, N=n_classes) — kept
    # in plain JAX (lane-sparse outputs would waste MXU / store slots).
    first_token = x.reshape(B, S, H)[:, 0, :].astype(jnp.float32)
    pooled = jnp.tanh(first_token @ params["pool_w"] + params["pool_b"])
    logits = pooled @ params["cls_w"] + params["cls_b"]
    return logits  # (B, n_classes) f32


# ----------------------------------- main -------------------------------------

if __name__ == "__main__":
    cfg = dict(vocab=100, hidden=32, layers=2, heads=2, inter=64,
               max_pos=16, n_classes=2)
    B, S = 2, 8

    key = jax.random.PRNGKey(0)
    k_params, k_ids = jax.random.split(key)
    params = init_params(k_params, cfg)

    input_ids = jax.random.randint(k_ids, (B, S), 0, cfg["vocab"], dtype=jnp.int32)
    attention_mask = jnp.ones((B, S), dtype=jnp.int32)

    # TODO(synk): pretrained HF weights / MaskedLM head are not reproducible
    # in-script; parameters are deterministic synthetic inits of the same shapes.
    logits = bert_classifier_forward(params, input_ids, attention_mask, cfg)
    jax.block_until_ready(logits)
    assert logits.shape == (B, cfg["n_classes"]) and logits.dtype == jnp.float32
    print("KERNEL_OK")
</pallas_src>

<mosaic_0001>
module attributes {stable_mosaic.version = 11 : i64} {
  func.func @_layernorm_kernel(%arg0: i32, %arg1: memref<16x32xf32, #tpu.memory_space<vmem>>, %arg2: memref<1x32xf32, #tpu.memory_space<vmem>>, %arg3: memref<1x32xf32, #tpu.memory_space<vmem>>, %arg4: memref<16x32xbf16, #tpu.memory_space<vmem>>) attributes {dimension_semantics = [#tpu.dimension_semantics<parallel>], iteration_bounds = array<i64: 1>, scalar_prefetch = 0 : i64, scratch_operands = 0 : i64, tpu.core_type = #tpu.core_type<tc>, window_params = [{transform_indices = @transform_0, window_bounds = array<i64: 16, 32>}, {pipeline_mode = #tpu.pipeline_mode<synchronous>, transform_indices = @transform_1, window_bounds = array<i64: 1, 32>}, {pipeline_mode = #tpu.pipeline_mode<synchronous>, transform_indices = @transform_2, window_bounds = array<i64: 1, 32>}, {transform_indices = @transform_3, window_bounds = array<i64: 16, 32>}]} {
    %c0 = arith.constant 0 : index
    %c0_0 = arith.constant 0 : index
    %0 = vector.load %arg1[%c0, %c0_0] : memref<16x32xf32, #tpu.memory_space<vmem>>, vector<16x32xf32>
    %c0_1 = arith.constant 0 : index
    %c0_2 = arith.constant 0 : index
    %1 = vector.load %arg2[%c0_1, %c0_2] : memref<1x32xf32, #tpu.memory_space<vmem>>, vector<1x32xf32>
    %c0_3 = arith.constant 0 : index
    %c0_4 = arith.constant 0 : index
    %2 = vector.load %arg3[%c0_3, %c0_4] : memref<1x32xf32, #tpu.memory_space<vmem>>, vector<1x32xf32>
    %cst = arith.constant dense<0.000000e+00> : vector<16xf32>
    %3 = vector.multi_reduction <add>, %0, %cst [1] : vector<16x32xf32> to vector<16xf32>
    %4 = vector.shape_cast %3 : vector<16xf32> to vector<16x1xf32>
    %cst_5 = arith.constant 3.200000e+01 : f32
    %5 = vector.broadcast %cst_5 : f32 to vector<16x1xf32>
    %6 = arith.divf %4, %5 : vector<16x1xf32>
    %7 = vector.broadcast %6 : vector<16x1xf32> to vector<16x32xf32>
    %8 = arith.subf %0, %7 : vector<16x32xf32>
    %9 = arith.mulf %8, %8 : vector<16x32xf32>
    %cst_6 = arith.constant dense<0.000000e+00> : vector<16xf32>
    %10 = vector.multi_reduction <add>, %9, %cst_6 [1] : vector<16x32xf32> to vector<16xf32>
    %11 = vector.shape_cast %10 : vector<16xf32> to vector<16x1xf32>
    %cst_7 = arith.constant 3.200000e+01 : f32
    %12 = vector.broadcast %cst_7 : f32 to vector<16x1xf32>
    %13 = arith.divf %11, %12 : vector<16x1xf32>
    %14 = vector.broadcast %6 : vector<16x1xf32> to vector<16x32xf32>
    %15 = arith.subf %0, %14 : vector<16x32xf32>
    %cst_8 = arith.constant 9.99999996E-13 : f32
    %16 = vector.broadcast %cst_8 : f32 to vector<16x1xf32>
    %17 = arith.addf %13, %16 : vector<16x1xf32>
    %18 = math.rsqrt %17 : vector<16x1xf32>
    %19 = vector.broadcast %18 : vector<16x1xf32> to vector<16x32xf32>
    %20 = arith.mulf %15, %19 : vector<16x32xf32>
    %21 = vector.broadcast %1 : vector<1x32xf32> to vector<16x32xf32>
    %22 = arith.mulf %20, %21 : vector<16x32xf32>
    %23 = vector.broadcast %2 : vector<1x32xf32> to vector<16x32xf32>
    %24 = arith.addf %22, %23 : vector<16x32xf32>
    %25 = arith.truncf %24 : vector<16x32xf32> to vector<16x32xbf16>
    %c0_9 = arith.constant 0 : index
    %c0_10 = arith.constant 0 : index
    %26 = vector.load %arg4[%c0_9, %c0_10] : memref<16x32xbf16, #tpu.memory_space<vmem>>, vector<16x32xbf16>
    tpu.vector_store %arg4[%c0_9, %c0_10], %25 {strides = array<i32>} : memref<16x32xbf16, #tpu.memory_space<vmem>>, vector<16x32xbf16>,
    return
  }
  func.func @transform_0(%arg0: i32) -> (i32, i32) {
    %c0_i32 = arith.constant 0 : i32
    %c0_i32_0 = arith.constant 0 : i32
    return %arg0, %c0_i32 : i32, i32
  }
  func.func @transform_1(%arg0: i32) -> (i32, i32) {
    %c0_i32 = arith.constant 0 : i32
    %c0_i32_0 = arith.constant 0 : i32
    %c0_i32_1 = arith.constant 0 : i32
    return %c0_i32, %c0_i32_0 : i32, i32
  }
  func.func @transform_2(%arg0: i32) -> (i32, i32) {
    %c0_i32 = arith.constant 0 : i32
    %c0_i32_0 = arith.constant 0 : i32
    %c0_i32_1 = arith.constant 0 : i32
    return %c0_i32, %c0_i32_0 : i32, i32
  }
  func.func @transform_3(%arg0: i32) -> (i32, i32) {
    %c0_i32 = arith.constant 0 : i32
    %c0_i32_0 = arith.constant 0 : i32
    return %arg0, %c0_i32 : i32, i32
  }
}

</mosaic_0001>

<bundles_post_ra>
// kernel: tpu_custom_call.1
= control target key start
LH: loop header
LB: loop body
LE: loop exit
PB: predicated region body
PF: predicated region fallthrough
CT: control target
= control target key end

     0   :  { %8 = vsyncpa [#allocation3], 0  ;;  %s229_s0 = inlined_call_operand.hbm [shape: f32[16,32], index: 0, kind: input, shape index: {}]   ;;  %s230_s1 = inlined_call_operand.vmem [shape: f32[1,32], index: 1, kind: input, shape index: {}]   ;;  %s231_s2 = inlined_call_operand.vmem [shape: f32[1,32], index: 2, kind: input, shape index: {}]   ;;  %s232_s3 = inlined_call_operand.hbm [shape: bf16[16,32], index: 3, kind: output, shape index: {}]  }
   0x1   :  { %9 = vsyncpa [#allocation4], 0  ;;  %s169_s12 = smov [#allocation2]   ;;  %s121_s16 = scalar_lea.hbm %s229_s0, 256 }
   0x2   :  { %s15_s13 = sshll.u32 %s169_s12, 4  ;;  %p122_p0 = scmp.ne.s32.totalorder %s229_s0, %s121_s16  ;;  %s16_s13 = int_to_ptr.vmem [resolvable:$true] %s15_s13 }
   0x3   :  { %p125_p1 = scmp.lt.u32.totalorder %s121_s16, %s229_s0 }
   0x5   :  { %p127_p2 = pnand %p125_p1, %p122_p0 }
   0x7   :  { %130 = shalt.err (!%p127_p2)
}
   0x8   :  { %s131_s21 = scalar_lea.vmem %s16_s13, 256  ;;  %p136_p4 = scmp.lt.s32.totalorder %s16_s13, %s16_s13 }
   0x9   :  { %p132_p3 = scmp.ne.s32.totalorder %s16_s13, %s131_s21  ;;  %p137_p5 = scmp.lt.s32.totalorder %s131_s21, %s131_s21 }
   0xb   :  { %p138_p6 = por %p137_p5, %p136_p4 }
   0xd   :  { %p139_p7 = pnand %p138_p6, %p132_p3 }
   0xf   :  { %142 = shalt.err (!%p139_p7)
}
  0x10   :  { %s170_s22 = smov 128   ;;  %s171_s23 = smov 8  }
  0x11   :  { %21 = dma.hbm_to_vmem [thread:$0]  %s229_s0, 256, %s16_s13, [#allocation3], %s170_s22, %s170_s22, %s171_s23  }
  0x12   :  { %165 = dma.done.wait [#allocation3], 256  }
  0x13   :  { %166 = vsyncadd [#allocation3], 4294967040  ;;  %vm33_vm0 = vcmask 261120   ;;  %v29_v0 = vld [vmem:[#allocation2] sm:$0xff]  ;;  %v30_v1 = vld [vmem:[#allocation2 + $0x8] sm:$0xff]  ;;  %vm85_vm1 = vcmask 257024  }
  0x14   :  { %v34_v2 = vsel %vm33_vm0, %v29_v0, 0.0  ;;  %v37_v3 = vsel %vm33_vm0, %v30_v1, 0.0  ;;  %v105_v21 = vld [vmem:[%s230_s1] ss:$0 sm:$0xff]  ;;  %s172_s29 = smov [#allocation5]  }
  0x15   :  { %35 = vadd.xlane.f32.xlu0 %v34_v2  ;;  %v106_v23 = vld [vmem:[%s231_s2] ss:$0 sm:$0xff]  ;;  %s93_s30 = sshll.u32 %s172_s29, 4  ;;  %s94_s30 = int_to_ptr.vmem [resolvable:$true] %s93_s30 }
  0x16   :  { %s143_s1 = scalar_lea.vmem %s94_s30, 128  ;;  %p148_p9 = scmp.lt.s32.totalorder %s94_s30, %s94_s30 }
  0x17   :  { %p144_p8 = scmp.ne.s32.totalorder %s94_s30, %s143_s1  ;;  %p149_p10 = scmp.lt.s32.totalorder %s143_s1, %s143_s1 }
  0x19   :  { %38 = vadd.xlane.f32.xlu0 %v37_v3  ;;  %p150_p11 = por %p149_p10, %p148_p9 }
  0x1b   :  { %p151_p12 = pnand %p150_p11, %p144_p8 }
  0xa2   :  { %v36_v4 = vpop.xlane.xlu0 %35 }
  0xa3   :  { %v41_v5 = vmul.f32 0.03125, %v36_v4 }
  0xa5   :  { %v43_v6 = vsub.f32 %v29_v0, %v41_v5 }
  0xa6   :  { %v39_v7 = vpop.xlane.xlu0 %38 }
  0xa7   :  { %v42_v8 = vmul.f32 0.03125, %v39_v7  ;;  %v45_v9 = vmul.f32 %v43_v6, %v43_v6 }
  0xa9   :  { %v44_v10 = vsub.f32 %v30_v1, %v42_v8  ;;  %v47_v11 = vsel %vm33_vm0, %v45_v9, 0.0 }
  0xaa   :  { %48 = vadd.xlane.f32.xlu1 %v47_v11 }
  0xab   :  { %v46_v12 = vmul.f32 %v44_v10, %v44_v10 }
  0xad   :  { %v50_v13 = vsel %vm33_vm0, %v46_v12, 0.0 }
  0xae   :  { %51 = vadd.xlane.f32.xlu1 %v50_v13 }
 0x137   :  { %v49_v14 = vpop.xlane.xlu1 %48 }
 0x138   :  { %v53_v15 = vmul.f32 0.03125, %v49_v14 }
 0x13a   :  { %v55_v16 = vadd.f32 1e-12, %v53_v15 }
 0x13b   :  { %v52_v17 = vpop.xlane.xlu1 %51 }
 0x13c   :  { %117 = vrsqrt.f32 %v55_v16  ;;  %v54_v18 = vmul.f32 0.03125, %v52_v17 }
 0x13e   :  { %v56_v19 = vadd.f32 1e-12, %v54_v18 }
 0x140   :  { %119 = vrsqrt.f32 %v56_v19 }
 0x146   :  { %v118_v20 = vpop.eup %117 }
 0x147   :  { %v59_v22 = vmul.f32 %v118_v20, %v43_v6 }
 0x149   :  { %v67_v24 = vmul.f32 %v105_v21, %v59_v22 }
 0x14a   :  { %v120_v25 = vpop.eup %119 }
 0x14b   :  { %v60_v26 = vmul.f32 %v120_v25, %v44_v10  ;;  %v75_v27 = vadd.f32 %v106_v23, %v67_v24 }
 0x14d   :  { %v68_v28 = vmul.f32 %v105_v21, %v60_v26  ;;  %v109_v29 = vpack.c.bf16 %v75_v27, %v75_v27 }
 0x14f   :  { %v76_v30 = vadd.f32 %v106_v23, %v68_v28  ;;  %86 = vst.msk [vmem:[#allocation5] sm:$0xf] %vm85_vm1, %v109_v29 }
 0x151   :  { %v110_v31 = vpack.c.bf16 %v76_v30, %v76_v30 }
 0x153   :  { %87 = vst.msk [vmem:[#allocation5 + $0x4] sm:$0xf] %vm85_vm1, %v110_v31 }
 0x154   :  { %154 = shalt.err (!%p151_p12)
}
 0x155   :  { %s155_s5 = scalar_lea.hbm %s232_s3, 128 }
 0x156   :  { %p156_p13 = scmp.ne.s32.totalorder %s232_s3, %s155_s5  ;;  %p159_p0 = scmp.lt.u32.totalorder %s155_s5, %s232_s3 }
 0x158   :  { %p161_p1 = pnand %p159_p0, %p156_p13 }
 0x15a   :  { %164 = shalt.err (!%p161_p1)
}
 0x15b   :  { %s173_s10 = smov 64   ;;  %s174_s11 = smov 4  }
 0x15c   :  { %99 = dma.vmem_to_hbm [thread:$0]  %s94_s30, 128, %s232_s3, [#allocation4], %s173_s10, %s173_s10, %s174_s11  }
 0x15d   :  { %167 = dma.done.wait [#allocation4], 128  }
 0x15e   :  { %168 = vsyncadd [#allocation4], 4294967168 }
 0x15f   :  { %103 = vsyncpa [#allocation3], 1 }
 0x160   :  { %104 = vsyncpa [#allocation4], 1 }

</bundles_post_ra>
